<compile_context>
chip_gen: v5e
topology: v5e:2x2
jax: 0.10.0
libtpu: 0.0.40
codegen_flags: <defaults>
</compile_context>

<pallas_src>
import functools
import math

import jax
import jax.numpy as jnp
from jax.experimental import pallas as pl
from jax.experimental.pallas import tpu as pltpu


_LANE = 128
_SUBLANE = 8
_TARGET_BLOCK_BYTES = 2 * 1024 * 1024   # aim for ~2 MiB input blocks
_MAX_BLOCK_BYTES = 8 * 1024 * 1024      # hard cap per input block


def _round_down_multiple(x, m):
    return (x // m) * m


def _vmem_limit(in_block_bytes, out_block_bytes):
    # Double-buffered in + out blocks, plus slack. Capped below v7x's 64 MiB
    # physical VMEM so the same kernel runs on v5e / v6e / v7x.
    need = 4 * (in_block_bytes + out_block_bytes) + (2 << 20)
    return int(min(56 * 2**20, max(32 * 2**20, need)))


def _plan_mid(outer, d, inner, itemsize):
    """Choose (TB, TILE_N, dense_out) for the (outer, D, inner) reduction."""
    # Lane tile over `inner`: multiple of 128 (or the full inner dim).
    if inner <= _LANE:
        tile_n = inner
    else:
        tile_n = _LANE
        while (tile_n * 2 <= inner
               and tile_n * 2 <= 2048
               and _SUBLANE * d * (tile_n * 2) * itemsize <= _MAX_BLOCK_BYTES):
            tile_n *= 2

    row_bytes = d * tile_n * itemsize
    tb = max(1, _TARGET_BLOCK_BYTES // row_bytes)
    tb = min(tb, outer)
    if tb != outer:
        # Output block (TB, TILE_N): TB must be a multiple of 8 (sublanes)
        # unless it equals the full outer dim.
        tb = _round_down_multiple(tb, _SUBLANE)
        if tb == 0:
            if _SUBLANE * row_bytes <= _MAX_BLOCK_BYTES and outer >= _SUBLANE:
                tb = _SUBLANE
            else:
                # TODO(synk): for extremely large D a D-tiled accumulator pass
                # would be needed; here we fall back to one outer row per block
                # with a 3-D output (leading block dim is unconstrained).
                return 1, tile_n, False
    return tb, tile_n, True


def _argmax_mid_kernel(x_ref, o_ref, *, is_float):
    # x_ref: (TB, D, TILE_N) or (1, D, TILE_N); reduce over axis -2 (D).
    x = x_ref[...]
    d = x.shape[-2]
    mx = jnp.max(x, axis=-2, keepdims=True)
    hit = x == mx
    if is_float:
        # torch.argmax: NaN is treated as the maximum -> first NaN index wins.
        hit = jnp.logical_or(hit, jnp.isnan(x))
    iota = jax.lax.broadcasted_iota(jnp.int32, x.shape, x.ndim - 2)
    cand = jnp.where(hit, iota, jnp.int32(d))
    idx = jnp.min(cand, axis=-2)              # first (lowest) matching index
    o_ref[...] = idx.reshape(o_ref.shape)


def _argmax_last_kernel(x_ref, o_ref, *, is_float):
    # x_ref: (TB, D); reduce over the lane axis.
    x = x_ref[...]
    d = x.shape[-1]
    mx = jnp.max(x, axis=-1, keepdims=True)
    hit = x == mx
    if is_float:
        hit = jnp.logical_or(hit, jnp.isnan(x))
    iota = jax.lax.broadcasted_iota(jnp.int32, x.shape, x.ndim - 1)
    cand = jnp.where(hit, iota, jnp.int32(d))
    o_ref[...] = jnp.min(cand, axis=-1, keepdims=True)   # (TB, 1)


@functools.partial(jax.jit, static_argnames=("dim",))
def argmax_pallas(x, dim: int):
    """Argmax over `dim`; removes that dim. Returns int32 indices.

    TODO(synk): PyTorch returns int64; int32 is used here (TPU-native), cast
    outside if strict dtype parity is required.
    """
    ndim = x.ndim
    dim = dim % ndim
    out_shape_full = tuple(s for i, s in enumerate(x.shape) if i != dim)

    d = x.shape[dim]
    outer = math.prod(x.shape[:dim]) if dim > 0 else 1
    inner = math.prod(x.shape[dim + 1:]) if dim + 1 < ndim else 1
    itemsize = x.dtype.itemsize
    is_float = bool(jnp.issubdtype(x.dtype, jnp.floating))

    cost = pl.CostEstimate(
        flops=2 * outer * d * inner,
        transcendentals=0,
        bytes_accessed=outer * d * inner * itemsize + outer * inner * 4)

    if inner == 1:
        # Last-dim argmax: put D on lanes, batch TB rows per block.
        x2 = x.reshape(outer, d)
        tb = max(1, _TARGET_BLOCK_BYTES // max(1, d * itemsize))
        tb = min(tb, outer)
        if tb != outer:
            tb = _round_down_multiple(tb, _SUBLANE)
            if tb == 0:
                # Very large D: one padded (<=8-row) block, or full dim if tiny.
                tb = outer if outer < _SUBLANE else _SUBLANE
        in_block = tb * d * itemsize
        out_block = tb * 4
        out2 = pl.pallas_call(
            functools.partial(_argmax_last_kernel, is_float=is_float),
            out_shape=jax.ShapeDtypeStruct((outer, 1), jnp.int32),
            grid_spec=pltpu.PrefetchScalarGridSpec(
                num_scalar_prefetch=0,
                grid=(pl.cdiv(outer, tb),),
                in_specs=[pl.BlockSpec((tb, d), lambda i: (i, 0))],
                out_specs=pl.BlockSpec((tb, 1), lambda i: (i, 0)),
            ),
            compiler_params=pltpu.CompilerParams(
                dimension_semantics=("parallel",),
                vmem_limit_bytes=_vmem_limit(in_block, out_block)),
            cost_estimate=cost,
        )(x2)
        return out2.reshape(out_shape_full)

    # Generic path: reduce the middle axis of (outer, D, inner).
    x3 = x.reshape(outer, d, inner)
    tb, tile_n, dense_out = _plan_mid(outer, d, inner, itemsize)
    grid = (pl.cdiv(outer, tb), pl.cdiv(inner, tile_n))
    in_block = tb * d * tile_n * itemsize
    kernel = functools.partial(_argmax_mid_kernel, is_float=is_float)

    if dense_out:
        out_block = tb * tile_n * 4
        out2 = pl.pallas_call(
            kernel,
            out_shape=jax.ShapeDtypeStruct((outer, inner), jnp.int32),
            grid_spec=pltpu.PrefetchScalarGridSpec(
                num_scalar_prefetch=0,
                grid=grid,
                in_specs=[pl.BlockSpec((tb, d, tile_n),
                                       lambda i, j: (i, 0, j))],
                out_specs=pl.BlockSpec((tb, tile_n), lambda i, j: (i, j)),
            ),
            compiler_params=pltpu.CompilerParams(
                dimension_semantics=("parallel", "parallel"),
                vmem_limit_bytes=_vmem_limit(in_block, out_block)),
            cost_estimate=cost,
        )(x3)
        return out2.reshape(out_shape_full)

    # Fallback for very large D: one outer row per block, 3-D output so the
    # leading block dim is unconstrained; inner is still lane-tiled.
    out_block = tile_n * 4
    out3 = pl.pallas_call(
        kernel,
        out_shape=jax.ShapeDtypeStruct((outer, 1, inner), jnp.int32),
        grid_spec=pltpu.PrefetchScalarGridSpec(
            num_scalar_prefetch=0,
            grid=grid,
            in_specs=[pl.BlockSpec((1, d, tile_n), lambda i, j: (i, 0, j))],
            out_specs=pl.BlockSpec((1, 1, tile_n), lambda i, j: (i, 0, j)),
        ),
        compiler_params=pltpu.CompilerParams(
            dimension_semantics=("parallel", "parallel"),
            vmem_limit_bytes=_vmem_limit(in_block, out_block)),
        cost_estimate=cost,
    )(x3)
    return out3.reshape(out_shape_full)


if __name__ == "__main__":
    # Small shapes consistent with the reference module (argmax over a dim).
    key = jax.random.PRNGKey(0)

    # 1) Middle-dim argmax (dense-output path).
    B, D, N = 2, 8, 128
    x = jax.random.normal(key, (B, D, N), dtype=jnp.float32)
    out = argmax_pallas(x, dim=1)
    jax.block_until_ready(out)
    ref = jnp.argmax(x, axis=1).astype(jnp.int32)
    assert out.shape == ref.shape, (out.shape, ref.shape)
    assert bool(jnp.all(out == ref)), "mismatch vs jnp.argmax (dim=1)"

    # 2) Middle-dim argmax with outer >= 8 (sublane-dense output blocks).
    x2 = jax.random.normal(jax.random.PRNGKey(1), (16, 8, 256),
                           dtype=jnp.float32)
    out2 = argmax_pallas(x2, dim=1)
    jax.block_until_ready(out2)
    ref2 = jnp.argmax(x2, axis=1).astype(jnp.int32)
    assert out2.shape == ref2.shape
    assert bool(jnp.all(out2 == ref2)), "mismatch vs jnp.argmax (outer>=8)"

    # 3) Last-dim argmax path.
    x3 = jax.random.normal(jax.random.PRNGKey(2), (4, 16, 32),
                           dtype=jnp.float32)
    out3 = argmax_pallas(x3, dim=2)
    jax.block_until_ready(out3)
    ref3 = jnp.argmax(x3, axis=2).astype(jnp.int32)
    assert out3.shape == ref3.shape
    assert bool(jnp.all(out3 == ref3)), "mismatch vs jnp.argmax (last dim)"

    # 4) Leading-dim argmax (outer == 1 edge case).
    x4 = jax.random.normal(jax.random.PRNGKey(3), (8, 4, 128),
                           dtype=jnp.float32)
    out4 = argmax_pallas(x4, dim=0)
    jax.block_until_ready(out4)
    ref4 = jnp.argmax(x4, axis=0).astype(jnp.int32)
    assert out4.shape == ref4.shape
    assert bool(jnp.all(out4 == ref4)), "mismatch vs jnp.argmax (dim=0)"

    print("KERNEL_OK")
</pallas_src>

<mosaic_0001>
module attributes {stable_mosaic.version = 11 : i64} {
  func.func @_argmax_mid_kernel(%arg0: i32, %arg1: i32, %arg2: memref<2x8x128xf32, #tpu.memory_space<vmem>>, %arg3: memref<2x128xi32, #tpu.memory_space<vmem>>) attributes {dimension_semantics = [#tpu.dimension_semantics<parallel>, #tpu.dimension_semantics<parallel>], iteration_bounds = array<i64: 1, 1>, scalar_prefetch = 0 : i64, scratch_operands = 0 : i64, tpu.core_type = #tpu.core_type<tc>, window_params = [{transform_indices = @transform_0, window_bounds = array<i64: 2, 8, 128>}, {transform_indices = @transform_1, window_bounds = array<i64: 2, 128>}]} {
    %c0 = arith.constant 0 : index
    %c0_0 = arith.constant 0 : index
    %c0_1 = arith.constant 0 : index
    %0 = vector.load %arg2[%c0, %c0_0, %c0_1] : memref<2x8x128xf32, #tpu.memory_space<vmem>>, vector<2x8x128xf32>
    %cst = arith.constant dense<0xFF800000> : vector<2x128xf32>
    %1 = vector.multi_reduction <maximumf>, %0, %cst [1] : vector<2x8x128xf32> to vector<2x128xf32>
    %2 = vector.shape_cast %1 : vector<2x128xf32> to vector<2x1x128xf32>
    %3 = vector.broadcast %2 : vector<2x1x128xf32> to vector<2x8x128xf32>
    %4 = arith.cmpf oeq, %0, %3 : vector<2x8x128xf32>
    %5 = arith.cmpf one, %0, %0 : vector<2x8x128xf32>
    %6 = arith.ori %4, %5 : vector<2x8x128xi1>
    %7 = tpu.iota {dimensions = array<i32: 1>} : vector<2x8x128xi32>
    %c8_i32 = arith.constant 8 : i32
    %8 = vector.broadcast %c8_i32 : i32 to vector<2x8x128xi32>
    %9 = arith.select %6, %7, %8 : vector<2x8x128xi1>, vector<2x8x128xi32>
    %cst_2 = arith.constant dense<2147483647> : vector<2x128xi32>
    %10 = vector.multi_reduction <minsi>, %9, %cst_2 [1] : vector<2x8x128xi32> to vector<2x128xi32>
    %c0_3 = arith.constant 0 : index
    %c0_4 = arith.constant 0 : index
    %11 = vector.load %arg3[%c0_3, %c0_4] : memref<2x128xi32, #tpu.memory_space<vmem>>, vector<2x128xi32>
    tpu.vector_store %arg3[%c0_3, %c0_4], %10 {strides = array<i32>} : memref<2x128xi32, #tpu.memory_space<vmem>>, vector<2x128xi32>,
    return
  }
  func.func @transform_0(%arg0: i32, %arg1: i32) -> (i32, i32, i32) {
    %c0_i32 = arith.constant 0 : i32
    %c0_i32_0 = arith.constant 0 : i32
    return %arg0, %c0_i32, %arg1 : i32, i32, i32
  }
  func.func @transform_1(%arg0: i32, %arg1: i32) -> (i32, i32) {
    %c0_i32 = arith.constant 0 : i32
    return %arg0, %arg1 : i32, i32
  }
}

</mosaic_0001>

<bundles_post_ra>
// kernel: argmax_pallas.1
= control target key start
LH: loop header
LB: loop body
LE: loop exit
PB: predicated region body
PF: predicated region fallthrough
CT: control target
= control target key end

     0   :  { %6 = vsyncpa [#allocation3], 0  ;;  %s163_s0 = inlined_call_operand.hbm [shape: f32[2,8,128], index: 0, kind: input, shape index: {}]   ;;  %s164_s1 = inlined_call_operand.hbm [shape: s32[2,128], index: 1, kind: output, shape index: {}]  }
   0x1   :  { %7 = vsyncpa [#allocation4], 0  ;;  %s12_s8 = sshll.u32 %s163_s0, 4  ;;  %s143_s9 = smov [#allocation2]   ;;  %s13_s8 = int_to_ptr.hbm [resolvable:$true] %s12_s8 }
   0x2   :  { %s14_s10 = sshll.u32 %s143_s9, 4  ;;  %s144_s11 = smov 128   ;;  %s15_s10 = int_to_ptr.vmem [resolvable:$true] %s14_s10 }
   0x3   :  { %s145_s12 = smov 8  }
   0x4   :  { %20 = dma.hbm_to_vmem [thread:$0]  %s13_s8, 256, %s15_s10, [#allocation3], %s144_s11, %s144_s11, %s145_s12  }
   0x5   :  { %139 = dma.done.wait [#allocation3], 256  }
   0x6   :  { %140 = vsyncadd [#allocation3], 4294967040  ;;  %v25_v0 = vld [vmem:[#allocation2] sm:$0xff]  ;;  %v26_v1 = vld [vmem:[#allocation2 + $0x8] sm:$0xff]  ;;  %v45_v10 = vlaneseq  ;;  %s146_s0 = smov [#allocation5]   ;;  %s77_s16 = sshll.u32 %s164_s1, 4  ;;  %s78_s16 = int_to_ptr.hbm [resolvable:$true] %s77_s16 }
   0x7   :  { %v27_v2 = vrot.slane %v25_v0, 4  ;;  %v33_v3 = vrot.slane %v26_v1, 4  ;;  %vm41_vm0 = vcmp.ne.f32.partialorder %v25_v0, %v25_v0  ;;  %vm42_vm1 = vcmp.ne.f32.partialorder %v26_v1, %v26_v1  ;;  %s75_s13 = sshll.u32 %s146_s0, 4  ;;  %s76_s13 = int_to_ptr.vmem [resolvable:$true] %s75_s13 }
   0x8   :  { %v46_v15 = vshrl.u32 %v45_v10, 7  ;;  %vm67_vm11 = vcmask 1041409  }
   0x9   :  { %v28_v4 = vmax.f32 %v25_v0, %v27_v2  ;;  %v34_v5 = vmax.f32 %v26_v1, %v33_v3 }
   0xb   :  { %v29_v6 = vrot.slane %v28_v4, 2  ;;  %v35_v7 = vrot.slane %v34_v5, 2 }
   0xd   :  { %v30_v8 = vmax.f32 %v28_v4, %v29_v6  ;;  %v36_v9 = vmax.f32 %v34_v5, %v35_v7 }
   0xf   :  { %v31_v11 = vrot.slane %v30_v8, 1  ;;  %v37_v12 = vrot.slane %v36_v9, 1 }
  0x11   :  { %v32_v13 = vmax.f32 %v30_v8, %v31_v11  ;;  %v38_v14 = vmax.f32 %v36_v9, %v37_v12 }
  0x13   :  { %vm39_vm2 = vcmp.eq.f32.partialorder %v25_v0, %v32_v13  ;;  %vm40_vm3 = vcmp.eq.f32.partialorder %v26_v1, %v38_v14 }
  0x14   :  { %vm43_vm4 = vmor %vm39_vm2, %vm41_vm0 }
  0x15   :  { %vm44_vm5 = vmor %vm40_vm3, %vm42_vm1  ;;  %v47_v16 = vsel %vm43_vm4, %v46_v15, 8 }
  0x16   :  { %v48_v17 = vsel %vm44_vm5, %v46_v15, 8  ;;  %v49_v18 = vrot.slane %v47_v16, 4 }
  0x17   :  { %v58_v19 = vrot.slane %v48_v17, 4 }
  0x18   :  { %vm50_vm6 = vcmp.lt.s32.totalorder %v47_v16, %v49_v18 }
  0x19   :  { %v51_v20 = vsel %vm50_vm6, %v47_v16, %v49_v18  ;;  %vm59_vm7 = vcmp.lt.s32.totalorder %v48_v17, %v58_v19 }
  0x1a   :  { %v52_v21 = vrot.slane %v51_v20, 2  ;;  %v60_v22 = vsel %vm59_vm7, %v48_v17, %v58_v19 }
  0x1b   :  { %v61_v23 = vrot.slane %v60_v22, 2 }
  0x1c   :  { %vm53_vm8 = vcmp.lt.s32.totalorder %v51_v20, %v52_v21 }
  0x1d   :  { %v54_v24 = vsel %vm53_vm8, %v51_v20, %v52_v21  ;;  %vm62_vm9 = vcmp.lt.s32.totalorder %v60_v22, %v61_v23 }
  0x1e   :  { %v55_v25 = vrot.slane %v54_v24, 1  ;;  %v63_v26 = vsel %vm62_vm9, %v60_v22, %v61_v23 }
  0x1f   :  { %v64_v27 = vrot.slane %v63_v26, 1 }
  0x20   :  { %vm56_vm10 = vcmp.lt.s32.totalorder %v54_v24, %v55_v25 }
  0x21   :  { %v57_v28 = vsel %vm56_vm10, %v54_v24, %v55_v25  ;;  %vm65_vm12 = vcmp.lt.s32.totalorder %v63_v26, %v64_v27 }
  0x22   :  { %v66_v29 = vsel %vm65_vm12, %v63_v26, %v64_v27 }
  0x23   :  { %v68_v30 = vsel %vm67_vm11, %v66_v29, %v57_v28 }
  0x24   :  { %69 = vst [vmem:[#allocation5] sm:$0x3] %v68_v30 }
  0x25   :  { %80 = dma.vmem_to_hbm [thread:$0]  %s76_s13, 32, %s78_s16, [#allocation4]  }
  0x26   :  { %141 = dma.done.wait [#allocation4], 32  }
  0x27   :  { %142 = vsyncadd [#allocation4], 4294967264 }
  0x28   :  { %85 = vsyncpa [#allocation3], 1 }
  0x29   :  { %86 = vsyncpa [#allocation4], 1 }

</bundles_post_ra>
